<compile_context>
chip_gen: v5e
topology: v5e:2x2
jax: 0.10.0
libtpu: 0.0.40
codegen_flags: <defaults>
</compile_context>

<pallas_src>
import functools

import jax
import jax.numpy as jnp
from jax.experimental import pallas as pl
from jax.experimental.pallas import tpu as pltpu

EPS = 1e-5


def _round_up(n, m):
    return ((n + m - 1) // m) * m


# ---------------------------------------------------------------------------
# Kernel
# ---------------------------------------------------------------------------
def actor_kernel(x_ref, slab_ref, vec_ref, out_ref, *, dims):
    sd, f1, f2, fo = dims["sd"], dims["f1"], dims["f2"], dims["fo"]
    r1, r2, r3 = dims["r1"], dims["r2"], dims["r3"]

    x = x_ref[...]
    inv_b = jnp.float32(1.0 / x.shape[0])

    # Carve the packed bf16 weight slab with static, tile-aligned views and
    # widen to f32 (accumulation / elementwise math stays f32 on all chips).
    w1 = slab_ref[r1:r1 + sd, :f1].astype(jnp.float32)
    w2 = slab_ref[r2:r2 + f1, :f2].astype(jnp.float32)
    w3 = slab_ref[r3:r3 + f2, :fo].astype(jnp.float32)

    # Per-feature vectors kept exact in f32: [g1, be1, g2, be2, b3_padded].
    g1, be1 = vec_ref[0:1, :f1], vec_ref[1:2, :f1]
    g2, be2 = vec_ref[2:3, :f2], vec_ref[3:4, :f2]
    b3 = vec_ref[4:5, :fo]

    def bn_relu(h, g, be):
        # Two-pass (mean-shifted) batch statistics: robust when |mu| >> sigma.
        mu = jnp.sum(h, axis=0, keepdims=True) * inv_b
        d = h - mu
        var = jnp.sum(d * d, axis=0, keepdims=True) * inv_b     # biased, f32
        scale = g * jax.lax.rsqrt(var + EPS)
        return jnp.maximum(d * scale + be, 0.0)

    # fc1 / fc2 biases omitted: cancelled exactly by the BN mean subtraction.
    h = bn_relu(jnp.dot(x, w1, preferred_element_type=jnp.float32), g1, be1)
    h = bn_relu(jnp.dot(h, w2, preferred_element_type=jnp.float32), g2, be2)

    # fc3 + tanh, lane-dense padded output (no masked stores).
    out_ref[...] = jnp.tanh(
        jnp.dot(h, w3, preferred_element_type=jnp.float32) + b3)


# ---------------------------------------------------------------------------
# Wrapper
# ---------------------------------------------------------------------------
def actor_forward(state, kernel_params):
    """state: (B, state_dim) f32 -> padded mu: (B, fo) f32 (lane-dense).

    Columns [:action_dim] hold tanh(fc3(...)); the remaining pad columns are
    exactly tanh(0) = 0.  Downstream should consume the padded slab directly
    (or fold the slice into its consumer) instead of forcing an extra copy.
    """
    slab, vec, dims = kernel_params
    if state.ndim == 1:                       # mirror the PyTorch unsqueeze
        state = state[None, :]
    B = state.shape[0]
    assert B >= 2, "training-mode BatchNorm needs batch size >= 2"
    assert state.shape[1] == dims["sd"]

    vmem = pl.BlockSpec(memory_space=pltpu.MemorySpace.VMEM)
    return pl.pallas_call(
        functools.partial(actor_kernel, dims=dims),
        out_shape=jax.ShapeDtypeStruct((B, dims["fo"]), jnp.float32),
        in_specs=[vmem, vmem, vmem],
        out_specs=vmem,
        # Working set ~0.3 MiB -> no vmem_limit_bytes override needed.
    )(state, slab, vec)


# ---------------------------------------------------------------------------
# Parameter init / packing / reference
# ---------------------------------------------------------------------------
def init_actor_params(key, state_dim, action_dim, fc1_units=128, fc2_units=128):
    """Deterministic init mirroring Actor.reset_parameters() (PyTorch layout
    transposed to (in, out)). Returns the full parameter tuple incl. b1/b2."""
    ks = jax.random.split(key, 6)

    # hidden_init uses weight.size()[0] == out_features as "fan_in" (module quirk).
    lim1 = 1.0 / jnp.sqrt(jnp.float32(fc1_units))
    lim2 = 1.0 / jnp.sqrt(jnp.float32(fc2_units))

    w1 = jax.random.uniform(ks[0], (state_dim, fc1_units), jnp.float32, -lim1, lim1)
    w2 = jax.random.uniform(ks[1], (fc1_units, fc2_units), jnp.float32, -lim2, lim2)
    w3 = jax.random.uniform(ks[2], (fc2_units, action_dim), jnp.float32, -3e-3, 3e-3)

    # biases: PyTorch default Linear init U(-1/sqrt(in_features), 1/sqrt(in_features))
    bl1 = 1.0 / jnp.sqrt(jnp.float32(state_dim))
    bl2 = 1.0 / jnp.sqrt(jnp.float32(fc1_units))
    bl3 = 1.0 / jnp.sqrt(jnp.float32(fc2_units))
    b1 = jax.random.uniform(ks[3], (1, fc1_units), jnp.float32, -bl1, bl1)
    b2 = jax.random.uniform(ks[4], (1, fc2_units), jnp.float32, -bl2, bl2)
    b3 = jax.random.uniform(ks[5], (1, action_dim), jnp.float32, -bl3, bl3)

    # BatchNorm affine params: gamma = 1, beta = 0
    g1 = jnp.ones((1, fc1_units), jnp.float32)
    be1 = jnp.zeros((1, fc1_units), jnp.float32)
    g2 = jnp.ones((1, fc2_units), jnp.float32)
    be2 = jnp.zeros((1, fc2_units), jnp.float32)

    return (w1, b1, g1, be1, w2, b2, g2, be2, w3, b3)


def pack_kernel_params(params, action_dim):
    """Pack params for the kernel:
      * drop b1/b2 (inert under training-mode BN),
      * coalesce w1|w2|w3_padded into ONE bf16 slab with 16-row-aligned
        section offsets (bf16 sublane tile = 16),
      * keep BN affine params + b3 exact in one small f32 (8, F) vec,
      * pad fc3 to a lane-dense (multiple-of-128) output width."""
    (w1, b1, g1, be1, w2, b2, g2, be2, w3, b3) = params
    del b1, b2  # mathematically cancelled by the BN mean subtraction
    sd, f1 = w1.shape
    f2 = w2.shape[1]
    fo = max(128, _round_up(action_dim, 128))
    fmax = max(f1, f2, fo)

    r1 = 0
    r2 = r1 + _round_up(sd, 16)
    r3 = r2 + _round_up(f1, 16)
    rows = r3 + _round_up(f2, 16)

    slab = jnp.zeros((rows, fmax), jnp.bfloat16)
    slab = slab.at[r1:r1 + sd, :f1].set(w1.astype(jnp.bfloat16))
    slab = slab.at[r2:r2 + f1, :f2].set(w2.astype(jnp.bfloat16))
    slab = slab.at[r3:r3 + f2, :action_dim].set(w3.astype(jnp.bfloat16))

    vec = jnp.zeros((8, fmax), jnp.float32)
    vec = vec.at[0, :f1].set(g1[0])
    vec = vec.at[1, :f1].set(be1[0])
    vec = vec.at[2, :f2].set(g2[0])
    vec = vec.at[3, :f2].set(be2[0])
    vec = vec.at[4, :action_dim].set(b3[0])

    dims = dict(sd=sd, f1=f1, f2=f2, fo=fo, r1=r1, r2=r2, r3=r3)
    return (slab, vec, dims)


def quantize_weights(params):
    """Round the Linear weights through bf16 (what the kernel stores in HBM),
    keeping everything else f32 — used for the tight kernel-math check."""
    (w1, b1, g1, be1, w2, b2, g2, be2, w3, b3) = params
    q = lambda w: w.astype(jnp.bfloat16).astype(jnp.float32)
    return (q(w1), b1, g1, be1, q(w2), b2, g2, be2, q(w3), b3)


def reference_forward(state, params):
    """Pure-JAX reference mirroring the PyTorch module exactly (with b1/b2)."""
    (w1, b1, g1, be1, w2, b2, g2, be2, w3, b3) = params

    def bn(h, g, be):
        mu = jnp.mean(h, axis=0, keepdims=True)
        var = jnp.mean((h - mu) ** 2, axis=0, keepdims=True)   # biased variance
        return (h - mu) / jnp.sqrt(var + EPS) * g + be

    h = jnp.maximum(bn(state @ w1 + b1, g1, be1), 0.0)
    h = jnp.maximum(bn(h @ w2 + b2, g2, be2), 0.0)
    return jnp.tanh(h @ w3 + b3)


# ---------------------------------------------------------------------------
if __name__ == "__main__":
    # Tennis env dims (state=24, action=2); B=128 so the MXU rows are filled
    # and the µs-scale launch cost is amortized over a real batch.
    B, STATE_DIM, ACTION_DIM = 128, 24, 2

    key = jax.random.PRNGKey(0)
    k_params, k_state = jax.random.split(key)
    params = init_actor_params(k_params, STATE_DIM, ACTION_DIM)
    kernel_params = pack_kernel_params(params, ACTION_DIM)
    state = jax.random.normal(k_state, (B, STATE_DIM), jnp.float32)

    out_padded = jax.block_until_ready(actor_forward(state, kernel_params))
    assert out_padded.shape == (B, kernel_params[2]["fo"])
    mu = out_padded[:, :ACTION_DIM]          # consumer-side slice (test only)

    # 1) Tight check: kernel math vs the same forward with bf16-stored weights.
    ref_q = reference_forward(state, quantize_weights(params))
    assert jnp.allclose(mu, ref_q, atol=2e-4, rtol=2e-4), \
        "kernel-math mismatch vs bf16-weight reference"

    # 2) Fidelity check: bf16 weight storage vs the exact f32 PyTorch forward.
    ref_f32 = reference_forward(state, params)
    assert jnp.allclose(mu, ref_f32, atol=2e-3, rtol=2e-3), \
        "bf16 weight storage drifted too far from f32 reference"

    # Pad columns must be exactly tanh(0) = 0 (lane-dense output, zero-padded).
    assert bool(jnp.all(out_padded[:, ACTION_DIM:] == 0.0))

    print("KERNEL_OK")
</pallas_src>

<mosaic_0001>
module attributes {stable_mosaic.version = 11 : i64} {
  func.func @actor_kernel(%arg0: memref<128x24xf32, #tpu.memory_space<vmem>>, %arg1: memref<288x128xbf16, #tpu.memory_space<vmem>>, %arg2: memref<8x128xf32, #tpu.memory_space<vmem>>, %arg3: memref<128x128xf32, #tpu.memory_space<vmem>>) attributes {dimension_semantics = [], scalar_prefetch = 0 : i64, scratch_operands = 0 : i64, tpu.core_type = #tpu.core_type<tc>} {
    %c0 = arith.constant 0 : index
    %c0_0 = arith.constant 0 : index
    %0 = vector.load %arg0[%c0, %c0_0] : memref<128x24xf32, #tpu.memory_space<vmem>>, vector<128x24xf32>
    %c0_1 = arith.constant 0 : index
    %c0_2 = arith.constant 0 : index
    %1 = vector.load %arg1[%c0_1, %c0_2] : memref<288x128xbf16, #tpu.memory_space<vmem>>, vector<24x128xbf16>
    %2 = arith.extf %1 : vector<24x128xbf16> to vector<24x128xf32>
    %c32 = arith.constant 32 : index
    %c0_3 = arith.constant 0 : index
    %3 = vector.load %arg1[%c32, %c0_3] : memref<288x128xbf16, #tpu.memory_space<vmem>>, vector<128x128xbf16>
    %4 = arith.extf %3 : vector<128x128xbf16> to vector<128x128xf32>
    %c160 = arith.constant 160 : index
    %c0_4 = arith.constant 0 : index
    %5 = vector.load %arg1[%c160, %c0_4] : memref<288x128xbf16, #tpu.memory_space<vmem>>, vector<128x128xbf16>
    %6 = arith.extf %5 : vector<128x128xbf16> to vector<128x128xf32>
    %c0_5 = arith.constant 0 : index
    %c0_6 = arith.constant 0 : index
    %7 = vector.load %arg2[%c0_5, %c0_6] : memref<8x128xf32, #tpu.memory_space<vmem>>, vector<1x128xf32>
    %c1 = arith.constant 1 : index
    %c0_7 = arith.constant 0 : index
    %8 = vector.load %arg2[%c1, %c0_7] : memref<8x128xf32, #tpu.memory_space<vmem>>, vector<1x128xf32>
    %c2 = arith.constant 2 : index
    %c0_8 = arith.constant 0 : index
    %9 = vector.load %arg2[%c2, %c0_8] : memref<8x128xf32, #tpu.memory_space<vmem>>, vector<1x128xf32>
    %c3 = arith.constant 3 : index
    %c0_9 = arith.constant 0 : index
    %10 = vector.load %arg2[%c3, %c0_9] : memref<8x128xf32, #tpu.memory_space<vmem>>, vector<1x128xf32>
    %c4 = arith.constant 4 : index
    %c0_10 = arith.constant 0 : index
    %11 = vector.load %arg2[%c4, %c0_10] : memref<8x128xf32, #tpu.memory_space<vmem>>, vector<1x128xf32>
    %cst = arith.constant dense<0.000000e+00> : vector<128x128xf32>
    %12 = tpu.matmul %0, %2, %cst {dimension_numbers = #tpu.dot_dimension_numbers<[1], [0], [0], [1], [0, 0, 1, 1], [], []>} : vector<128x24xf32>, vector<24x128xf32>, vector<128x128xf32> -> vector<128x128xf32>
    %cst_11 = arith.constant dense<0.000000e+00> : vector<128xf32>
    %13 = vector.multi_reduction <add>, %12, %cst_11 [0] : vector<128x128xf32> to vector<128xf32>
    %14 = vector.shape_cast %13 : vector<128xf32> to vector<1x128xf32>
    %cst_12 = arith.constant 7.812500e-03 : f32
    %15 = vector.broadcast %cst_12 : f32 to vector<1x128xf32>
    %16 = arith.mulf %14, %15 : vector<1x128xf32>
    %17 = vector.broadcast %16 : vector<1x128xf32> to vector<128x128xf32>
    %18 = arith.subf %12, %17 : vector<128x128xf32>
    %19 = arith.mulf %18, %18 : vector<128x128xf32>
    %cst_13 = arith.constant dense<0.000000e+00> : vector<128xf32>
    %20 = vector.multi_reduction <add>, %19, %cst_13 [0] : vector<128x128xf32> to vector<128xf32>
    %21 = vector.shape_cast %20 : vector<128xf32> to vector<1x128xf32>
    %cst_14 = arith.constant 7.812500e-03 : f32
    %22 = vector.broadcast %cst_14 : f32 to vector<1x128xf32>
    %23 = arith.mulf %21, %22 : vector<1x128xf32>
    %cst_15 = arith.constant 9.99999974E-6 : f32
    %24 = vector.broadcast %cst_15 : f32 to vector<1x128xf32>
    %25 = arith.addf %23, %24 : vector<1x128xf32>
    %26 = math.rsqrt %25 : vector<1x128xf32>
    %27 = arith.mulf %7, %26 : vector<1x128xf32>
    %28 = vector.broadcast %27 : vector<1x128xf32> to vector<128x128xf32>
    %29 = arith.mulf %18, %28 : vector<128x128xf32>
    %30 = vector.broadcast %8 : vector<1x128xf32> to vector<128x128xf32>
    %31 = arith.addf %29, %30 : vector<128x128xf32>
    %cst_16 = arith.constant 0.000000e+00 : f32
    %32 = vector.broadcast %cst_16 : f32 to vector<128x128xf32>
    %33 = arith.maximumf %31, %32 : vector<128x128xf32>
    %cst_17 = arith.constant dense<0.000000e+00> : vector<128x128xf32>
    %34 = tpu.matmul %33, %4, %cst_17 {dimension_numbers = #tpu.dot_dimension_numbers<[1], [0], [0], [1], [0, 0, 1, 1], [], []>} : vector<128x128xf32>, vector<128x128xf32>, vector<128x128xf32> -> vector<128x128xf32>
    %cst_18 = arith.constant dense<0.000000e+00> : vector<128xf32>
    %35 = vector.multi_reduction <add>, %34, %cst_18 [0] : vector<128x128xf32> to vector<128xf32>
    %36 = vector.shape_cast %35 : vector<128xf32> to vector<1x128xf32>
    %cst_19 = arith.constant 7.812500e-03 : f32
    %37 = vector.broadcast %cst_19 : f32 to vector<1x128xf32>
    %38 = arith.mulf %36, %37 : vector<1x128xf32>
    %39 = vector.broadcast %38 : vector<1x128xf32> to vector<128x128xf32>
    %40 = arith.subf %34, %39 : vector<128x128xf32>
    %41 = arith.mulf %40, %40 : vector<128x128xf32>
    %cst_20 = arith.constant dense<0.000000e+00> : vector<128xf32>
    %42 = vector.multi_reduction <add>, %41, %cst_20 [0] : vector<128x128xf32> to vector<128xf32>
    %43 = vector.shape_cast %42 : vector<128xf32> to vector<1x128xf32>
    %cst_21 = arith.constant 7.812500e-03 : f32
    %44 = vector.broadcast %cst_21 : f32 to vector<1x128xf32>
    %45 = arith.mulf %43, %44 : vector<1x128xf32>
    %cst_22 = arith.constant 9.99999974E-6 : f32
    %46 = vector.broadcast %cst_22 : f32 to vector<1x128xf32>
    %47 = arith.addf %45, %46 : vector<1x128xf32>
    %48 = math.rsqrt %47 : vector<1x128xf32>
    %49 = arith.mulf %9, %48 : vector<1x128xf32>
    %50 = vector.broadcast %49 : vector<1x128xf32> to vector<128x128xf32>
    %51 = arith.mulf %40, %50 : vector<128x128xf32>
    %52 = vector.broadcast %10 : vector<1x128xf32> to vector<128x128xf32>
    %53 = arith.addf %51, %52 : vector<128x128xf32>
    %cst_23 = arith.constant 0.000000e+00 : f32
    %54 = vector.broadcast %cst_23 : f32 to vector<128x128xf32>
    %55 = arith.maximumf %53, %54 : vector<128x128xf32>
    %cst_24 = arith.constant dense<0.000000e+00> : vector<128x128xf32>
    %56 = tpu.matmul %55, %6, %cst_24 {dimension_numbers = #tpu.dot_dimension_numbers<[1], [0], [0], [1], [0, 0, 1, 1], [], []>} : vector<128x128xf32>, vector<128x128xf32>, vector<128x128xf32> -> vector<128x128xf32>
    %57 = vector.broadcast %11 : vector<1x128xf32> to vector<128x128xf32>
    %58 = arith.addf %56, %57 : vector<128x128xf32>
    %59 = math.tanh %58 : vector<128x128xf32>
    %c0_25 = arith.constant 0 : index
    %c0_26 = arith.constant 0 : index
    %60 = vector.load %arg3[%c0_25, %c0_26] : memref<128x128xf32, #tpu.memory_space<vmem>>, vector<128x128xf32>
    tpu.vector_store %arg3[%c0_25, %c0_26], %59 {strides = array<i32>} : memref<128x128xf32, #tpu.memory_space<vmem>>, vector<128x128xf32>,
    return
  }
}

</mosaic_0001>

<bundles_post_ra>
// kernel: tpu_custom_call.1
= control target key start
LH: loop header
LB: loop body
LE: loop exit
PB: predicated region body
PF: predicated region fallthrough
CT: control target
= control target key end

     0   :  { %s1246_s0 = inlined_call_operand.vmem [shape: f32[128,24], index: 0, kind: input, shape index: {}]   ;;  %s1247_s1 = inlined_call_operand.vmem [shape: bf16[288,128], index: 1, kind: input, shape index: {}]   ;;  %s1248_s2 = inlined_call_operand.vmem [shape: f32[8,128], index: 2, kind: input, shape index: {}]   ;;  %s1249_s3 = inlined_call_operand.hbm [shape: f32[128,128], index: 3, kind: output, shape index: {}]  }
   0x1   :  { %v33_v0 = vld [vmem:[%s1247_s1 + $0x8] sm:$0xf]  ;;  %v694_v1 = vld [vmem:[%s1247_s1] sm:$0xff]  }
   0x2   :  { %v36_v2 = vunpack.c.l.bf16 %v33_v0  ;;  %v696_v3 = vunpack.c.h.bf16 %v694_v1  ;;  %v695_v4 = vunpack.c.l.bf16 %v694_v1 }
   0x4   :  { %168 = vmatpush.msra.mxu0 %v36_v2 }
   0x5   :  { %8 = vsyncpa [#allocation3], 0  ;;  %v15_v5 = vld [vmem:[%s1246_s0] sm:$0xff]  ;;  %vm106_vm0 = vcmask 195584   ;;  %v16_v6 = vld [vmem:[%s1246_s0 + $0x8] sm:$0xff]  ;;  %s665_s9 = sshll.u32 %s1249_s3, 4  ;;  %s666_s9 = int_to_ptr.hbm [resolvable:$true] %s665_s9 }
   0x6   :  { %169 = vmatpush.msra.mxu0 %v696_v3  ;;  %v17_v7 = vld [vmem:[%s1246_s0 + $0x10] sm:$0xff]  ;;  %v18_v8 = vld [vmem:[%s1246_s0 + $0x18] sm:$0xff]  ;;  %v19_v9 = vld [vmem:[%s1246_s0 + $0x20] sm:$0xff]  ;;  %s878_s10 = smov 128   ;;  %s879_s11 = smov 8  }
   0x7   :  { %v20_v10 = vld [vmem:[%s1246_s0 + $0x28] sm:$0xff]  ;;  %v21_v11 = vld [vmem:[%s1246_s0 + $0x30] sm:$0xff]  ;;  %v22_v12 = vld [vmem:[%s1246_s0 + $0x38] sm:$0xff] }
   0x8   :  { %170 = vmatpush.msra.mxu0 %v695_v4  ;;  %v23_v13 = vld [vmem:[%s1246_s0 + $0x40] sm:$0xff]  ;;  %v24_v14 = vld [vmem:[%s1246_s0 + $0x48] sm:$0xff]  ;;  %v25_v15 = vld [vmem:[%s1246_s0 + $0x50] sm:$0xff] }
   0x9   :  { %677 = vmatmul.msk.f32.vlgmr.msra.gmra.mxu0 %vm106_vm0, %v15_v5  ;;  %v26_v16 = vld [vmem:[%s1246_s0 + $0x58] sm:$0xff]  ;;  %v27_v17 = vld [vmem:[%s1246_s0 + $0x60] sm:$0xff]  ;;  %v28_v18 = vld [vmem:[%s1246_s0 + $0x68] sm:$0xff] }
   0xa   :  { %v29_v19 = vld [vmem:[%s1246_s0 + $0x70] sm:$0xff]  ;;  %v30_v20 = vld [vmem:[%s1246_s0 + $0x78] sm:$0xff] }
  0x11   :  { %678 = vmatmul.msk.f32.gmra.mxu0 %vm106_vm0, %v16_v6 }
  0x19   :  { %679 = vmatmul.msk.f32.gmra.mxu0 %vm106_vm0, %v17_v7 }
  0x21   :  { %680 = vmatmul.msk.f32.gmra.mxu0 %vm106_vm0, %v18_v8 }
  0x29   :  { %681 = vmatmul.msk.f32.gmra.mxu0 %vm106_vm0, %v19_v9 }
  0x31   :  { %682 = vmatmul.msk.f32.gmra.mxu0 %vm106_vm0, %v20_v10 }
  0x39   :  { %683 = vmatmul.msk.f32.gmra.mxu0 %vm106_vm0, %v21_v11 }
  0x41   :  { %684 = vmatmul.msk.f32.gmra.mxu0 %vm106_vm0, %v22_v12 }
  0x49   :  { %685 = vmatmul.msk.f32.gmra.mxu0 %vm106_vm0, %v23_v13 }
  0x51   :  { %686 = vmatmul.msk.f32.gmra.mxu0 %vm106_vm0, %v24_v14 }
  0x59   :  { %687 = vmatmul.msk.f32.gmra.mxu0 %vm106_vm0, %v25_v15 }
  0x61   :  { %688 = vmatmul.msk.f32.gmra.mxu0 %vm106_vm0, %v26_v16  ;;  %v768_v16 = vld [vmem:[%s1247_s1 + $0x48] sm:$0xff]  }
  0x69   :  { %689 = vmatmul.msk.f32.gmra.mxu0 %vm106_vm0, %v27_v17 }
  0x71   :  { %690 = vmatmul.msk.f32.gmra.mxu0 %vm106_vm0, %v28_v18 }
  0x79   :  { %691 = vmatmul.msk.f32.gmra.mxu0 %vm106_vm0, %v29_v19 }
  0x81   :  { %692 = vmatmul.msk.f32.gmra.mxu0 %vm106_vm0, %v30_v20  ;;  %v728_v20 = vunpack.c.h.bf16 %v768_v16 }
  0x83   :  { %358 = vmatpush.msra.mxu1 %v728_v20  ;;  %777 = vmatpush.msra.mxu3 %v728_v20 }
  0x86   :  { %v172_v21 = vpop.f32.mrf.mxu0 }
  0x8e   :  { %v175_v22 = vpop.f32.mrf.mxu0 }
  0x8f   :  { %v220_v33 = vadd.f32 %v175_v22, %v172_v21 }
  0x96   :  { %v178_v23 = vpop.f32.mrf.mxu0 }
  0x97   :  { %v221_v34 = vadd.f32 %v220_v33, %v178_v23 }
  0x9e   :  { %v181_v24 = vpop.f32.mrf.mxu0 }
  0x9f   :  { %v222_v36 = vadd.f32 %v221_v34, %v181_v24 }
  0xa6   :  { %v184_v25 = vpop.f32.mrf.mxu0 }
  0xa7   :  { %v223_v37 = vadd.f32 %v222_v36, %v184_v25 }
  0xae   :  { %v187_v26 = vpop.f32.mrf.mxu0 }
  0xaf   :  { %v224_v38 = vadd.f32 %v223_v37, %v187_v26 }
  0xb6   :  { %v190_v27 = vpop.f32.mrf.mxu0 }
  0xb7   :  { %v225_v39 = vadd.f32 %v224_v38, %v190_v27 }
  0xbe   :  { %v193_v28 = vpop.f32.mrf.mxu0 }
  0xbf   :  { %v226_v41 = vadd.f32 %v225_v39, %v193_v28 }
  0xc6   :  { %v196_v29 = vpop.f32.mrf.mxu0 }
  0xc7   :  { %v227_v42 = vadd.f32 %v226_v41, %v196_v29 }
  0xce   :  { %v199_v30 = vpop.f32.mrf.mxu0 }
  0xcf   :  { %v228_v43 = vadd.f32 %v227_v42, %v199_v30 }
  0xd6   :  { %v202_v31 = vpop.f32.mrf.mxu0 }
  0xd7   :  { %v229_v44 = vadd.f32 %v228_v43, %v202_v31 }
  0xde   :  { %v205_v32 = vpop.f32.mrf.mxu0 }
  0xdf   :  { %v230_v46 = vadd.f32 %v229_v44, %v205_v32 }
  0xe6   :  { %v970_v35 = vpop.f32.mrf.mxu0 }
  0xe7   :  { %v231_v47 = vadd.f32 %v230_v46, %v970_v35 }
  0xee   :  { %v972_v40 = vpop.f32.mrf.mxu0 }
  0xef   :  { %v232_v48 = vadd.f32 %v231_v47, %v972_v40 }
  0xf6   :  { %v974_v45 = vpop.f32.mrf.mxu0 }
  0xf7   :  { %v233_v49 = vadd.f32 %v232_v48, %v974_v45 }
  0xfe   :  { %v979_v50 = vpop.f32.mrf.mxu0 }
  0xff   :  { %v234_v51 = vadd.f32 %v233_v49, %v979_v50 }
 0x101   :  { %v235_v52 = vrot.slane %v234_v51, 4 }
 0x103   :  { %v236_v53 = vadd.f32 %v235_v52, %v234_v51  ;;  %v764_v52 = vld [vmem:[%s1247_s1 + $0x28] sm:$0xff]  }
 0x105   :  { %v237_v54 = vrot.slane %v236_v53, 2 }
 0x107   :  { %v238_v55 = vadd.f32 %v237_v54, %v236_v53  ;;  %v712_v54 = vunpack.c.h.bf16 %v764_v52 }
 0x109   :  { %v239_v56 = vrot.slane %v238_v55, 1 }
 0x10b   :  { %v240_v57 = vadd.f32 %v239_v56, %v238_v55  ;;  %v711_v56 = vunpack.c.l.bf16 %v764_v52 }
 0x10d   :  { %v241_v58 = vmul.f32 0.0078125, %v240_v57  ;;  %v763_v57 = vld [vmem:[%s1247_s1 + $0x20] sm:$0xff]  }
 0x10f   :  { %v982_v59 = vsub.f32 %v172_v21, %v241_v58  ;;  %v984_v60 = vsub.f32 %v175_v22, %v241_v58  ;;  %v986_v61 = vsub.f32 %v178_v23, %v241_v58  ;;  %v992_v0 = vsub.f32 %v181_v24, %v241_v58 }
 0x110   :  { %v994_v1 = vsub.f32 %v184_v25, %v241_v58  ;;  %v998_v4 = vsub.f32 %v187_v26, %v241_v58  ;;  %v1002_v7 = vsub.f32 %v190_v27, %v241_v58  ;;  %v1006_v10 = vsub.f32 %v193_v28, %v241_v58  ;;  %v767_v25 = vld [vmem:[%s1247_s1 + $0x40] sm:$0xff]  }
 0x111   :  { %v258_v62 = vmul.f32 %v982_v59, %v982_v59  ;;  %v259_v63 = vmul.f32 %v984_v60, %v984_v60  ;;  %v260_v2 = vmul.f32 %v986_v61, %v986_v61  ;;  %v261_v5 = vmul.f32 %v992_v0, %v992_v0 }
 0x112   :  { %v262_v8 = vmul.f32 %v994_v1, %v994_v1  ;;  %v263_v11 = vmul.f32 %v998_v4, %v998_v4  ;;  %v1010_v13 = vsub.f32 %v196_v29, %v241_v58  ;;  %v264_v14 = vmul.f32 %v1002_v7, %v1002_v7 }
 0x113   :  { %v274_v3 = vadd.f32 %v259_v63, %v258_v62  ;;  %v1017_v17 = vsub.f32 %v199_v30, %v241_v58  ;;  %v265_v18 = vmul.f32 %v1006_v10, %v1006_v10  ;;  %v1021_v21 = vsub.f32 %v202_v31, %v241_v58 }
 0x114   :  { %v266_v22 = vmul.f32 %v1010_v13, %v1010_v13  ;;  %v727_v24 = vunpack.c.l.bf16 %v768_v16  ;;  %v1028_v26 = vsub.f32 %v205_v32, %v241_v58  ;;  %v724_v29 = vunpack.c.h.bf16 %v767_v25  ;;  %v766_v32 = vld [vmem:[%s1247_s1 + $0x38] sm:$0xff]  }
 0x115   :  { %v275_v6 = vadd.f32 %v274_v3, %v260_v2  ;;  %v267_v27 = vmul.f32 %v1017_v17, %v1017_v17  ;;  %v1033_v30 = vsub.f32 %v970_v35, %v241_v58  ;;  %v268_v31 = vmul.f32 %v1021_v21, %v1021_v21  ;;  %v762_v3 = vld [vmem:[%s1247_s1 + $0x18] sm:$0xff]  }
 0x116   :  { %359 = vmatpush.msra.mxu1 %v727_v24  ;;  %778 = vmatpush.msra.mxu3 %v727_v24  ;;  %v723_v34 = vunpack.c.l.bf16 %v767_v25  ;;  %v1041_v36 = vsub.f32 %v972_v40, %v241_v58  ;;  %v269_v37 = vmul.f32 %v1028_v26, %v1028_v26  ;;  %v720_v35 = vunpack.c.h.bf16 %v766_v32  ;;  %v765_v40 = vld [vmem:[%s1247_s1 + $0x30] sm:$0xff]  }
 0x117   :  { %v276_v9 = vadd.f32 %v275_v6, %v261_v5  ;;  %v1046_v39 = vsub.f32 %v974_v45, %v241_v58  ;;  %v270_v41 = vmul.f32 %v1033_v30, %v1033_v30  ;;  %v719_v43 = vunpack.c.l.bf16 %v766_v32 }
 0x118   :  { %360 = vmatpush.msra.mxu1 %v724_v29  ;;  %779 = vmatpush.msra.mxu3 %v724_v29  ;;  %v1054_v44 = vsub.f32 %v979_v50, %v241_v58  ;;  %v271_v46 = vmul.f32 %v1041_v36, %v1041_v36  ;;  %v716_v45 = vunpack.c.h.bf16 %v765_v40  ;;  %v715_v51 = vunpack.c.l.bf16 %v765_v40 }
 0x119   :  { %v277_v12 = vadd.f32 %v276_v9, %v262_v8  ;;  %v272_v48 = vmul.f32 %v1046_v39, %v1046_v39  ;;  %v708_v62 = vunpack.c.h.bf16 %v763_v57  ;;  %v707_v2 = vunpack.c.l.bf16 %v763_v57 }
 0x11a   :  { %361 = vmatpush.msra.mxu1 %v723_v34  ;;  %780 = vmatpush.msra.mxu3 %v723_v34  ;;  %v273_v50 = vmul.f32 %v1054_v44, %v1054_v44  ;;  %v704_v6 = vunpack.c.h.bf16 %v762_v3  ;;  %v703_v9 = vunpack.c.l.bf16 %v762_v3  ;;  %v812_v34 = vld [vmem:[%s1248_s2 + $0x1] ss:$0 sm:$0xff] }
 0x11b   :  { %v278_v15 = vadd.f32 %v277_v12, %v263_v11  ;;  %v761_v11 = vld [vmem:[%s1247_s1 + $0x10] sm:$0xff]  }
 0x11c   :  { %362 = vmatpush.msra.mxu1 %v720_v35  ;;  %781 = vmatpush.msra.mxu3 %v720_v35  ;;  %v700_v12 = vunpack.c.h.bf16 %v761_v11 }
 0x11d   :  { %v279_v19 = vadd.f32 %v278_v15, %v264_v14  ;;  %v699_v15 = vunpack.c.l.bf16 %v761_v11 }
 0x11e   :  { %363 = vmatpush.msra.mxu1 %v719_v43  ;;  %782 = vmatpush.msra.mxu3 %v719_v43 }
 0x11f   :  { %v280_v23 = vadd.f32 %v279_v19, %v265_v18 }
 0x120   :  { %364 = vmatpush.msra.mxu1 %v716_v45  ;;  %783 = vmatpush.msra.mxu3 %v716_v45 }
 0x121   :  { %v281_v28 = vadd.f32 %v280_v23, %v266_v22 }
 0x122   :  { %365 = vmatpush.msra.mxu1 %v715_v51  ;;  %784 = vmatpush.msra.mxu3 %v715_v51 }
 0x123   :  { %v282_v33 = vadd.f32 %v281_v28, %v267_v27  ;;  %v101_v27 = vld [vmem:[%s1248_s2] sm:$0x1] }
 0x124   :  { %366 = vmatpush.msra.mxu1 %v712_v54  ;;  %785 = vmatpush.msra.mxu3 %v712_v54 }
 0x125   :  { %v283_v38 = vadd.f32 %v282_v33, %v268_v31 }
 0x126   :  { %367 = vmatpush.msra.mxu1 %v711_v56  ;;  %786 = vmatpush.msra.mxu3 %v711_v56 }
 0x127   :  { %v284_v42 = vadd.f32 %v283_v38, %v269_v37 }
 0x128   :  { %368 = vmatpush.msra.mxu1 %v708_v62  ;;  %787 = vmatpush.msra.mxu3 %v708_v62 }
 0x129   :  { %v285_v47 = vadd.f32 %v284_v42, %v270_v41 }
 0x12a   :  { %369 = vmatpush.msra.mxu1 %v707_v2  ;;  %788 = vmatpush.msra.mxu3 %v707_v2 }
 0x12b   :  { %v286_v49 = vadd.f32 %v285_v47, %v271_v46 }
 0x12c   :  { %370 = vmatpush.msra.mxu1 %v704_v6  ;;  %789 = vmatpush.msra.mxu3 %v704_v6 }
 0x12d   :  { %v287_v53 = vadd.f32 %v286_v49, %v272_v48 }
 0x12e   :  { %371 = vmatpush.msra.mxu1 %v703_v9  ;;  %790 = vmatpush.msra.mxu3 %v703_v9 }
 0x12f   :  { %v288_v55 = vadd.f32 %v287_v53, %v273_v50 }
 0x130   :  { %372 = vmatpush.msra.mxu1 %v700_v12  ;;  %791 = vmatpush.msra.mxu3 %v700_v12 }
 0x131   :  { %v289_v58 = vrot.slane %v288_v55, 4 }
 0x132   :  { %373 = vmatpush.msra.mxu1 %v699_v15  ;;  %792 = vmatpush.msra.mxu3 %v699_v15 }
 0x133   :  { %v290_v63 = vadd.f32 %v289_v58, %v288_v55 }
 0x135   :  { %v291_v5 = vrot.slane %v290_v63, 2 }
 0x137   :  { %v292_v8 = vadd.f32 %v291_v5, %v290_v63 }
 0x139   :  { %v293_v14 = vrot.slane %v292_v8, 1 }
 0x13b   :  { %v294_v16 = vadd.f32 %v293_v14, %v292_v8 }
 0x13d   :  { %v295_v18 = vmul.f32 0.0078125, %v294_v16 }
 0x13f   :  { %v296_v19 = vadd.f32 1e-05, %v295_v18 }
 0x141   :  { %815 = vrsqrt.f32 %v296_v19  ;;  %vm303_vm2 = vweird.f32 %v296_v19 }
 0x147   :  { %v816_v20 = vpop.eup %815 }
 0x148   :  { %v298_v22 = vmul.f32 %v816_v20, %v296_v19  ;;  %vm304_vm1 = vweird.f32 %v816_v20 }
 0x149   :  { %vm305_vm3 = vmor %vm303_vm2, %vm304_vm1 }
 0x14a   :  { %v299_v23 = vmul.f32 %v816_v20, %v298_v22 }
 0x14c   :  { %v300_v24 = vmul.f32 0.5, %v299_v23 }
 0x14e   :  { %v301_v25 = vsub.f32 1.5, %v300_v24 }
 0x150   :  { %v302_v28 = vmul.f32 %v816_v20, %v301_v25 }
 0x152   :  { %v306_v29 = vsel %vm305_vm3, %v816_v20, %v302_v28 }
 0x153   :  { %v307_v31 = vmul.f32 %v306_v29, %v101_v27 }
 0x155   :  { %v308_v33 = vperm.slane %v307_v31, 0 }
 0x157   :  { %v309_v32 = vmul.f32 %v308_v33, %v982_v59  ;;  %v321_v37 = vmul.f32 %v308_v33, %v1033_v30  ;;  %v310_v43 = vmul.f32 %v308_v33, %v984_v60  ;;  %v322_v40 = vmul.f32 %v308_v33, %v1041_v36 }
 0x158   :  { %v317_v46 = vmul.f32 %v308_v33, %v1010_v13  ;;  %v318_v47 = vmul.f32 %v308_v33, %v1017_v17  ;;  %v319_v45 = vmul.f32 %v308_v33, %v1021_v21  ;;  %v320_v30 = vmul.f32 %v308_v33, %v1028_v26 }
 0x159   :  { %v326_v38 = vadd.f32 %v812_v34, %v309_v32  ;;  %v338_v35 = vadd.f32 %v812_v34, %v321_v37  ;;  %v327_v48 = vadd.f32 %v812_v34, %v310_v43  ;;  %v339_v59 = vadd.f32 %v812_v34, %v322_v40 }
 0x15a   :  { %v334_v49 = vadd.f32 %v812_v34, %v317_v46  ;;  %v335_v51 = vadd.f32 %v812_v34, %v318_v47  ;;  %v336_v52 = vadd.f32 %v812_v34, %v319_v45  ;;  %v337_v50 = vadd.f32 %v812_v34, %v320_v30 }
 0x15b   :  { %v342_v41 = vmax.f32 %v326_v38, 0.0  ;;  %v354_v42 = vmax.f32 %v338_v35, 0.0  ;;  %v343_v53 = vmax.f32 %v327_v48, 0.0  ;;  %v355_v60 = vmax.f32 %v339_v59, 0.0 }
 0x15c   :  { %v311_v36 = vmul.f32 %v308_v33, %v986_v61  ;;  %v323_v54 = vmul.f32 %v308_v33, %v1046_v39  ;;  %v324_v21 = vmul.f32 %v308_v33, %v1054_v44  ;;  %v312_v26 = vmul.f32 %v308_v33, %v992_v0 }
 0x15d   :  { %374 = vmatmul.f32.vlgmr.msra.gmra.mxu1 %v342_v41  ;;  %410 = vmatmul.f32.vlgmr.msra.gmra.mxu3 %v354_v42  ;;  %v313_v61 = vmul.f32 %v308_v33, %v994_v1  ;;  %v314_v3 = vmul.f32 %v308_v33, %v998_v4  ;;  %v315_v6 = vmul.f32 %v308_v33, %v1002_v7  ;;  %v350_v1 = vmax.f32 %v334_v49, 0.0 }
 0x15e   :  { %v328_v13 = vadd.f32 %v812_v34, %v311_v36  ;;  %v340_v17 = vadd.f32 %v812_v34, %v323_v54  ;;  %v329_v57 = vadd.f32 %v812_v34, %v312_v26  ;;  %v341_v58 = vadd.f32 %v812_v34, %v324_v21 }
 0x15f   :  { %v330_v39 = vadd.f32 %v812_v34, %v313_v61  ;;  %v331_v44 = vadd.f32 %v812_v34, %v314_v3  ;;  %v332_v0 = vadd.f32 %v812_v34, %v315_v6  ;;  %v316_v9 = vmul.f32 %v308_v33, %v1006_v10 }
 0x160   :  { %v344_v55 = vmax.f32 %v328_v13, 0.0  ;;  %v356_v56 = vmax.f32 %v340_v17, 0.0  ;;  %v345_v62 = vmax.f32 %v329_v57, 0.0  ;;  %v357_v63 = vmax.f32 %v341_v58, 0.0 }
 0x161   :  { %v346_v2 = vmax.f32 %v330_v39, 0.0  ;;  %v347_v5 = vmax.f32 %v331_v44, 0.0  ;;  %v348_v8 = vmax.f32 %v332_v0, 0.0  ;;  %v333_v11 = vadd.f32 %v812_v34, %v316_v9 }
 0x162   :  { %v351_v14 = vmax.f32 %v335_v51, 0.0  ;;  %v352_v15 = vmax.f32 %v336_v52, 0.0  ;;  %v353_v4 = vmax.f32 %v337_v50, 0.0 }
 0x163   :  { %v349_v12 = vmax.f32 %v333_v11, 0.0 }
 0x165   :  { %377 = vmatmul.f32.gmra.mxu1 %v343_v53  ;;  %413 = vmatmul.f32.gmra.mxu3 %v355_v60 }
 0x16d   :  { %380 = vmatmul.f32.gmra.mxu1 %v344_v55  ;;  %416 = vmatmul.f32.gmra.mxu3 %v356_v56 }
 0x175   :  { %383 = vmatmul.f32.gmra.mxu1 %v345_v62  ;;  %419 = vmatmul.f32.gmra.mxu3 %v357_v63 }
 0x17d   :  { %386 = vmatmul.f32.gmra.mxu1 %v346_v2 }
 0x185   :  { %389 = vmatmul.f32.gmra.mxu1 %v347_v5 }
 0x18d   :  { %392 = vmatmul.f32.gmra.mxu1 %v348_v8 }
 0x195   :  { %395 = vmatmul.f32.gmra.mxu1 %v349_v12 }
 0x19d   :  { %398 = vmatmul.f32.gmra.mxu1 %v350_v1 }
 0x1a5   :  { %401 = vmatmul.f32.gmra.mxu1 %v351_v14 }
 0x1ad   :  { %404 = vmatmul.f32.gmra.mxu1 %v352_v15 }
 0x1b5   :  { %407 = vmatmul.f32.gmra.mxu1 %v353_v4 }
 0x1da   :  { %v375_v16 = vpop.f32.mrf.mxu1 }
 0x1e0   :  { %v1096_v25 = vpop.f32.mrf.mxu3 }
 0x1e2   :  { %v378_v18 = vpop.f32.mrf.mxu1 }
 0x1e3   :  { %v423_v27 = vadd.f32 %v378_v18, %v375_v16 }
 0x1e8   :  { %v1098_v34 = vpop.f32.mrf.mxu3 }
 0x1ea   :  { %v381_v7 = vpop.f32.mrf.mxu1 }
 0x1eb   :  { %v424_v28 = vadd.f32 %v423_v27, %v381_v7 }
 0x1f0   :  { %v1100_v43 = vpop.f32.mrf.mxu3 }
 0x1f2   :  { %v384_v19 = vpop.f32.mrf.mxu1 }
 0x1f3   :  { %v425_v31 = vadd.f32 %v424_v28, %v384_v19  ;;  %v775_v28 = vld [vmem:[%s1247_s1 + $0x80] sm:$0xff]  }
 0x1f8   :  { %v1105_v30 = vpop.f32.mrf.mxu3 }
 0x1fa   :  { %v387_v20 = vpop.f32.mrf.mxu1 }
 0x1fb   :  { %v426_v33 = vadd.f32 %v425_v31, %v387_v20 }
 0x202   :  { %v390_v22 = vpop.f32.mrf.mxu1 }
 0x203   :  { %v427_v32 = vadd.f32 %v426_v33, %v390_v22 }
 0x20a   :  { %v393_v23 = vpop.f32.mrf.mxu1 }
 0x20b   :  { %v428_v37 = vadd.f32 %v427_v32, %v393_v23 }
 0x212   :  { %v396_v10 = vpop.f32.mrf.mxu1 }
 0x213   :  { %v429_v35 = vadd.f32 %v428_v37, %v396_v10 }
 0x21a   :  { %v399_v24 = vpop.f32.mrf.mxu1 }
 0x21b   :  { %v430_v41 = vadd.f32 %v429_v35, %v399_v24 }
 0x222   :  { %v402_v29 = vpop.f32.mrf.mxu1 }
 0x223   :  { %v431_v42 = vadd.f32 %v430_v41, %v402_v29  ;;  %v774_v41 = vld [vmem:[%s1247_s1 + $0x78] sm:$0xff]  }
 0x22a   :  { %v405_v38 = vpop.f32.mrf.mxu1 }
 0x22b   :  { %v432_v40 = vadd.f32 %v431_v42, %v405_v38 }
 0x232   :  { %v408_v46 = vpop.f32.mrf.mxu1 }
 0x233   :  { %v433_v47 = vadd.f32 %v432_v40, %v408_v46 }
 0x235   :  { %v434_v45 = vadd.f32 %v433_v47, %v1096_v25 }
 0x237   :  { %v435_v48 = vadd.f32 %v434_v45, %v1098_v34 }
 0x239   :  { %v436_v59 = vadd.f32 %v435_v48, %v1100_v43  ;;  %v773_v48 = vld [vmem:[%s1247_s1 + $0x70] sm:$0xff]  }
 0x23b   :  { %v437_v49 = vadd.f32 %v436_v59, %v1105_v30  ;;  %v748_v59 = vunpack.c.h.bf16 %v773_v48 }
 0x23d   :  { %v438_v51 = vrot.slane %v437_v49, 4 }
 0x23f   :  { %v439_v52 = vadd.f32 %v438_v51, %v437_v49  ;;  %v747_v51 = vunpack.c.l.bf16 %v773_v48 }
 0x241   :  { %v440_v50 = vrot.slane %v439_v52, 2 }
 0x243   :  { %v441_v53 = vadd.f32 %v440_v50, %v439_v52  ;;  %v772_v50 = vld [vmem:[%s1247_s1 + $0x68] sm:$0xff]  }
 0x245   :  { %v442_v60 = vrot.slane %v441_v53, 1 }
 0x247   :  { %v443_v36 = vadd.f32 %v442_v60, %v441_v53  ;;  %v744_v53 = vunpack.c.h.bf16 %v772_v50 }
 0x249   :  { %v444_v54 = vmul.f32 0.0078125, %v443_v36  ;;  %v743_v36 = vunpack.c.l.bf16 %v772_v50 }
 0x24b   :  { %v1108_v13 = vsub.f32 %v375_v16, %v444_v54  ;;  %v1110_v17 = vsub.f32 %v378_v18, %v444_v54  ;;  %v1112_v21 = vsub.f32 %v381_v7, %v444_v54  ;;  %v1118_v26 = vsub.f32 %v384_v19, %v444_v54  ;;  %v776_v18 = vld [vmem:[%s1247_s1 + $0x88] sm:$0xff]  }
 0x24c   :  { %v1120_v57 = vsub.f32 %v387_v20, %v444_v54  ;;  %v1124_v63 = vsub.f32 %v390_v22, %v444_v54  ;;  %v1128_v2 = vsub.f32 %v393_v23, %v444_v54  ;;  %v1132_v5 = vsub.f32 %v396_v10, %v444_v54 }
 0x24d   :  { %v461_v55 = vmul.f32 %v1108_v13, %v1108_v13  ;;  %v462_v56 = vmul.f32 %v1110_v17, %v1110_v17  ;;  %v463_v58 = vmul.f32 %v1112_v21, %v1112_v21  ;;  %v464_v61 = vmul.f32 %v1118_v26, %v1118_v26 }
 0x24e   :  { %v465_v3 = vmul.f32 %v1120_v57, %v1120_v57  ;;  %v466_v6 = vmul.f32 %v1124_v63, %v1124_v63  ;;  %v1136_v8 = vsub.f32 %v399_v24, %v444_v54  ;;  %v467_v9 = vmul.f32 %v1128_v2, %v1128_v2 }
 0x24f   :  { %v477_v62 = vadd.f32 %v462_v56, %v461_v55  ;;  %v1140_v12 = vsub.f32 %v402_v29, %v444_v54  ;;  %v468_v1 = vmul.f32 %v1132_v5, %v1132_v5  ;;  %v1144_v15 = vsub.f32 %v405_v38, %v444_v54  ;;  %v771_v55 = vld [vmem:[%s1247_s1 + $0x60] sm:$0xff]  }
 0x250   :  { %v469_v4 = vmul.f32 %v1136_v8, %v1136_v8  ;;  %v760_v7 = vunpack.c.h.bf16 %v776_v18  ;;  %v1151_v19 = vsub.f32 %v408_v46, %v444_v54  ;;  %v759_v23 = vunpack.c.l.bf16 %v776_v18 }
 0x251   :  { %v478_v39 = vadd.f32 %v477_v62, %v463_v58  ;;  %v470_v20 = vmul.f32 %v1140_v12, %v1140_v12  ;;  %v1156_v10 = vsub.f32 %v1096_v25, %v444_v54  ;;  %v471_v24 = vmul.f32 %v1144_v15, %v1144_v15 }
 0x252   :  { %562 = vmatpush.msra.mxu2 %v760_v7  ;;  %793 = vmatpush.msrb.mxu3 %v760_v7  ;;  %v756_v29 = vunpack.c.h.bf16 %v775_v28  ;;  %v1164_v31 = vsub.f32 %v1098_v34, %v444_v54  ;;  %v472_v33 = vmul.f32 %v1151_v19, %v1151_v19  ;;  %v755_v25 = vunpack.c.l.bf16 %v775_v28 }
 0x253   :  { %v479_v44 = vadd.f32 %v478_v39, %v464_v61  ;;  %v1169_v37 = vsub.f32 %v1100_v43, %v444_v54  ;;  %v473_v38 = vmul.f32 %v1156_v10, %v1156_v10  ;;  %v752_v34 = vunpack.c.h.bf16 %v774_v41  ;;  %v770_v39 = vld [vmem:[%s1247_s1 + $0x58] sm:$0xff]  }
 0x254   :  { %563 = vmatpush.msra.mxu2 %v759_v23  ;;  %794 = vmatpush.msrb.mxu3 %v759_v23  ;;  %v1177_v42 = vsub.f32 %v1105_v30, %v444_v54  ;;  %v474_v40 = vmul.f32 %v1164_v31, %v1164_v31  ;;  %v751_v43 = vunpack.c.l.bf16 %v774_v41  ;;  %v740_v56 = vunpack.c.h.bf16 %v771_v55  ;;  %v103_v23 = vld [vmem:[%s1248_s2 + $0x2] sm:$0x1] }
 0x255   :  { %v480_v0 = vadd.f32 %v479_v44, %v465_v3  ;;  %v475_v47 = vmul.f32 %v1169_v37, %v1169_v37  ;;  %v739_v62 = vunpack.c.l.bf16 %v771_v55  ;;  %v769_v3 = vld [vmem:[%s1247_s1 + $0x50] sm:$0xff]   ;;  %v736_v44 = vunpack.c.h.bf16 %v770_v39 }
 0x256   :  { %564 = vmatpush.msra.mxu2 %v756_v29  ;;  %795 = vmatpush.msrb.mxu3 %v756_v29  ;;  %v476_v30 = vmul.f32 %v1177_v42, %v1177_v42 }
 0x257   :  { %v481_v11 = vadd.f32 %v480_v0, %v466_v6  ;;  %v735_v6 = vunpack.c.l.bf16 %v770_v39 }
 0x258   :  { %565 = vmatpush.msra.mxu2 %v755_v25  ;;  %796 = vmatpush.msrb.mxu3 %v755_v25 }
 0x259   :  { %v482_v14 = vadd.f32 %v481_v11, %v467_v9  ;;  %v732_v9 = vunpack.c.h.bf16 %v769_v3 }
 0x25a   :  { %566 = vmatpush.msra.mxu2 %v752_v34  ;;  %797 = vmatpush.msrb.mxu3 %v752_v34 }
 0x25b   :  { %v483_v16 = vadd.f32 %v482_v14, %v468_v1  ;;  %v731_v1 = vunpack.c.l.bf16 %v769_v3 }
 0x25c   :  { %567 = vmatpush.msra.mxu2 %v751_v43  ;;  %798 = vmatpush.msrb.mxu3 %v751_v43 }
 0x25d   :  { %v484_v22 = vadd.f32 %v483_v16, %v469_v4 }
 0x25e   :  { %568 = vmatpush.msra.mxu2 %v748_v59  ;;  %799 = vmatpush.msrb.mxu3 %v748_v59 }
 0x25f   :  { %v485_v27 = vadd.f32 %v484_v22, %v470_v20 }
 0x260   :  { %569 = vmatpush.msra.mxu2 %v747_v51  ;;  %800 = vmatpush.msrb.mxu3 %v747_v51 }
 0x261   :  { %v486_v32 = vadd.f32 %v485_v27, %v471_v24 }
 0x262   :  { %570 = vmatpush.msra.mxu2 %v744_v53  ;;  %801 = vmatpush.msrb.mxu3 %v744_v53 }
 0x263   :  { %v487_v35 = vadd.f32 %v486_v32, %v472_v33  ;;  %v813_v33 = vld [vmem:[%s1248_s2 + $0x3] ss:$0 sm:$0xff] }
 0x264   :  { %571 = vmatpush.msra.mxu2 %v743_v36  ;;  %802 = vmatpush.msrb.mxu3 %v743_v36 }
 0x265   :  { %v488_v46 = vadd.f32 %v487_v35, %v473_v38 }
 0x266   :  { %572 = vmatpush.msra.mxu2 %v740_v56  ;;  %803 = vmatpush.msrb.mxu3 %v740_v56 }
 0x267   :  { %v489_v45 = vadd.f32 %v488_v46, %v474_v40 }
 0x268   :  { %573 = vmatpush.msra.mxu2 %v739_v62  ;;  %804 = vmatpush.msrb.mxu3 %v739_v62 }
 0x269   :  { %v490_v49 = vadd.f32 %v489_v45, %v475_v47 }
 0x26a   :  { %574 = vmatpush.msra.mxu2 %v736_v44  ;;  %805 = vmatpush.msrb.mxu3 %v736_v44 }
 0x26b   :  { %v491_v52 = vadd.f32 %v490_v49, %v476_v30 }
 0x26c   :  { %575 = vmatpush.msra.mxu2 %v735_v6  ;;  %806 = vmatpush.msrb.mxu3 %v735_v6 }
 0x26d   :  { %v492_v60 = vrot.slane %v491_v52, 4 }
 0x26e   :  { %576 = vmatpush.msra.mxu2 %v732_v9  ;;  %807 = vmatpush.msrb.mxu3 %v732_v9 }
 0x26f   :  { %v493_v54 = vadd.f32 %v492_v60, %v491_v52 }
 0x270   :  { %577 = vmatpush.msra.mxu2 %v731_v1  ;;  %808 = vmatpush.msrb.mxu3 %v731_v1 }
 0x271   :  { %v494_v58 = vrot.slane %v493_v54, 2 }
 0x273   :  { %v495_v61 = vadd.f32 %v494_v58, %v493_v54 }
 0x275   :  { %v496_v0 = vrot.slane %v495_v61, 1 }
 0x277   :  { %v497_v11 = vadd.f32 %v496_v0, %v495_v61 }
 0x279   :  { %v498_v14 = vmul.f32 0.0078125, %v497_v11 }
 0x27b   :  { %v499_v4 = vadd.f32 1e-05, %v498_v14 }
 0x27d   :  { %817 = vrsqrt.f32 %v499_v4  ;;  %vm506_vm5 = vweird.f32 %v499_v4 }
 0x283   :  { %v818_v16 = vpop.eup %817 }
 0x284   :  { %v501_v18 = vmul.f32 %v818_v16, %v499_v4  ;;  %vm507_vm4 = vweird.f32 %v818_v16 }
 0x285   :  { %vm508_vm6 = vmor %vm506_vm5, %vm507_vm4 }
 0x286   :  { %v502_v7 = vmul.f32 %v818_v16, %v501_v18 }
 0x288   :  { %v503_v20 = vmul.f32 0.5, %v502_v7 }
 0x28a   :  { %v504_v22 = vsub.f32 1.5, %v503_v20 }
 0x28c   :  { %v505_v24 = vmul.f32 %v818_v16, %v504_v22 }
 0x28e   :  { %v509_v27 = vsel %vm508_vm6, %v818_v16, %v505_v24 }
 0x28f   :  { %v510_v28 = vmul.f32 %v509_v27, %v103_v23 }
 0x291   :  { %v511_v29 = vperm.slane %v510_v28, 0 }
 0x293   :  { %v512_v32 = vmul.f32 %v511_v29, %v1108_v13  ;;  %v524_v25 = vmul.f32 %v511_v29, %v1156_v10  ;;  %v523_v41 = vmul.f32 %v511_v29, %v1151_v19  ;;  %v513_v46 = vmul.f32 %v511_v29, %v1110_v17 }
 0x294   :  { %v525_v43 = vmul.f32 %v511_v29, %v1164_v31  ;;  %v520_v47 = vmul.f32 %v511_v29, %v1136_v8  ;;  %v521_v45 = vmul.f32 %v511_v29, %v1140_v12  ;;  %v522_v13 = vmul.f32 %v511_v29, %v1144_v15 }
 0x295   :  { %v529_v38 = vadd.f32 %v813_v33, %v512_v32  ;;  %v541_v35 = vadd.f32 %v813_v33, %v524_v25  ;;  %v530_v48 = vadd.f32 %v813_v33, %v513_v46  ;;  %v540_v59 = vadd.f32 %v813_v33, %v523_v41 }
 0x296   :  { %v542_v10 = vadd.f32 %v813_v33, %v525_v43  ;;  %v537_v30 = vadd.f32 %v813_v33, %v520_v47  ;;  %v538_v49 = vadd.f32 %v813_v33, %v521_v45  ;;  %v539_v19 = vadd.f32 %v813_v33, %v522_v13 }
 0x297   :  { %v545_v34 = vmax.f32 %v529_v38, 0.0  ;;  %v557_v40 = vmax.f32 %v541_v35, 0.0  ;;  %v546_v51 = vmax.f32 %v530_v48, 0.0  ;;  %v514_v17 = vmul.f32 %v511_v29, %v1112_v21 }
 0x298   :  { %v558_v52 = vmax.f32 %v542_v10, 0.0  ;;  %v526_v31 = vmul.f32 %v511_v29, %v1169_v37  ;;  %v515_v15 = vmul.f32 %v511_v29, %v1118_v26  ;;  %v527_v60 = vmul.f32 %v511_v29, %v1177_v42 }
 0x299   :  { %578 = vmatmul.f32.vlgmr.msra.gmra.mxu2 %v545_v34  ;;  %614 = vmatmul.f32.vlgmr.msrb.gmra.mxu3 %v557_v40  ;;  %v531_v50 = vadd.f32 %v813_v33, %v514_v17  ;;  %v516_v21 = vmul.f32 %v511_v29, %v1120_v57  ;;  %v517_v62 = vmul.f32 %v511_v29, %v1124_v63  ;;  %v553_v57 = vmax.f32 %v537_v30, 0.0 }
 0x29a   :  { %v543_v8 = vadd.f32 %v813_v33, %v526_v31  ;;  %v532_v36 = vadd.f32 %v813_v33, %v515_v15  ;;  %v544_v54 = vadd.f32 %v813_v33, %v527_v60  ;;  %v518_v26 = vmul.f32 %v511_v29, %v1128_v2  ;;  %v1225_v2 = vld [vmem:[%s1248_s2 + $0x4] ss:$0 sm:$0xff]  ;;  %s877_s2 = smov [#allocation2]  }
 0x29b   :  { %v547_v53 = vmax.f32 %v531_v50, 0.0  ;;  %v533_v37 = vadd.f32 %v813_v33, %v516_v21  ;;  %v534_v61 = vadd.f32 %v813_v33, %v517_v62  ;;  %v519_v44 = vmul.f32 %v511_v29, %v1132_v5  ;;  %s663_s6 = sshll.u32 %s877_s2, 4  ;;  %s664_s6 = int_to_ptr.vmem [resolvable:$true] %s663_s6 }
 0x29c   :  { %v559_v12 = vmax.f32 %v543_v8, 0.0  ;;  %v548_v55 = vmax.f32 %v532_v36, 0.0  ;;  %v560_v56 = vmax.f32 %v544_v54, 0.0  ;;  %v535_v42 = vadd.f32 %v813_v33, %v518_v26 }
 0x29d   :  { %v549_v58 = vmax.f32 %v533_v37, 0.0  ;;  %v550_v39 = vmax.f32 %v534_v61, 0.0  ;;  %v536_v6 = vadd.f32 %v813_v33, %v519_v44  ;;  %v554_v9 = vmax.f32 %v538_v49, 0.0 }
 0x29e   :  { %v551_v3 = vmax.f32 %v535_v42, 0.0  ;;  %v555_v11 = vmax.f32 %v539_v19, 0.0  ;;  %v556_v63 = vmax.f32 %v540_v59, 0.0 }
 0x29f   :  { %v552_v0 = vmax.f32 %v536_v6, 0.0 }
 0x2a1   :  { %581 = vmatmul.f32.gmra.mxu2 %v546_v51  ;;  %617 = vmatmul.f32.gmra.mxu3 %v558_v52 }
 0x2a9   :  { %584 = vmatmul.f32.gmra.mxu2 %v547_v53  ;;  %620 = vmatmul.f32.gmra.mxu3 %v559_v12 }
 0x2b1   :  { %587 = vmatmul.f32.gmra.mxu2 %v548_v55  ;;  %623 = vmatmul.f32.gmra.mxu3 %v560_v56 }
 0x2b9   :  { %590 = vmatmul.f32.gmra.mxu2 %v549_v58 }
 0x2c1   :  { %593 = vmatmul.f32.gmra.mxu2 %v550_v39 }
 0x2c9   :  { %596 = vmatmul.f32.gmra.mxu2 %v551_v3 }
 0x2d1   :  { %599 = vmatmul.f32.gmra.mxu2 %v552_v0 }
 0x2d9   :  { %602 = vmatmul.f32.gmra.mxu2 %v553_v57 }
 0x2e1   :  { %605 = vmatmul.f32.gmra.mxu2 %v554_v9 }
 0x2e9   :  { %608 = vmatmul.f32.gmra.mxu2 %v555_v11 }
 0x2f1   :  { %611 = vmatmul.f32.gmra.mxu2 %v556_v63 }
 0x31c   :  { %v579_v1 = vpop.f32.mrf.mxu2  ;;  %v615_v14 = vpop.f32.mrf.mxu3 }
 0x31d   :  { %v580_v5 = vadd.f32 %v1225_v2, %v579_v1  ;;  %v616_v4 = vadd.f32 %v1225_v2, %v615_v14 }
 0x31f   :  { %819 = vtanh.f32 %v580_v5 }
 0x320   :  { %821 = vtanh.f32 %v616_v4 }
 0x324   :  { %v582_v16 = vpop.f32.mrf.mxu2  ;;  %v618_v18 = vpop.f32.mrf.mxu3 }
 0x325   :  { %v820_v7 = vpop.eup %819  ;;  %v583_v20 = vadd.f32 %v1225_v2, %v582_v16  ;;  %v619_v22 = vadd.f32 %v1225_v2, %v618_v18 }
 0x326   :  { %v822_v23 = vpop.eup %821  ;;  %643 = vst [vmem:[#allocation2] sm:$0xff] %v820_v7 }
 0x327   :  { %655 = vst [vmem:[#allocation2 + $0x60] sm:$0xff] %v822_v23  ;;  %823 = vtanh.f32 %v583_v20 }
 0x328   :  { %825 = vtanh.f32 %v619_v22 }
 0x32c   :  { %v585_v24 = vpop.f32.mrf.mxu2  ;;  %v621_v27 = vpop.f32.mrf.mxu3 }
 0x32d   :  { %v824_v28 = vpop.eup %823  ;;  %v586_v29 = vadd.f32 %v1225_v2, %v585_v24  ;;  %v622_v33 = vadd.f32 %v1225_v2, %v621_v27 }
 0x32e   :  { %v826_v32 = vpop.eup %825  ;;  %644 = vst [vmem:[#allocation2 + $0x8] sm:$0xff] %v824_v28 }
 0x32f   :  { %656 = vst [vmem:[#allocation2 + $0x68] sm:$0xff] %v826_v32  ;;  %827 = vtanh.f32 %v586_v29 }
 0x330   :  { %829 = vtanh.f32 %v622_v33 }
 0x334   :  { %v588_v25 = vpop.f32.mrf.mxu2  ;;  %v624_v38 = vpop.f32.mrf.mxu3 }
 0x335   :  { %v828_v35 = vpop.eup %827  ;;  %v589_v41 = vadd.f32 %v1225_v2, %v588_v25  ;;  %v625_v34 = vadd.f32 %v1225_v2, %v624_v38 }
 0x336   :  { %v830_v40 = vpop.eup %829  ;;  %645 = vst [vmem:[#allocation2 + $0x10] sm:$0xff] %v828_v35 }
 0x337   :  { %657 = vst [vmem:[#allocation2 + $0x70] sm:$0xff] %v830_v40  ;;  %831 = vtanh.f32 %v589_v41 }
 0x338   :  { %833 = vtanh.f32 %v625_v34 }
 0x33c   :  { %v591_v46 = vpop.f32.mrf.mxu2 }
 0x33d   :  { %v832_v43 = vpop.eup %831  ;;  %v592_v47 = vadd.f32 %v1225_v2, %v591_v46 }
 0x33e   :  { %v834_v45 = vpop.eup %833  ;;  %646 = vst [vmem:[#allocation2 + $0x18] sm:$0xff] %v832_v43 }
 0x33f   :  { %658 = vst [vmem:[#allocation2 + $0x78] sm:$0xff] %v834_v45  ;;  %835 = vtanh.f32 %v592_v47 }
 0x344   :  { %v594_v13 = vpop.f32.mrf.mxu2 }
 0x345   :  { %v836_v48 = vpop.eup %835  ;;  %v595_v10 = vadd.f32 %v1225_v2, %v594_v13 }
 0x346   :  { %647 = vst [vmem:[#allocation2 + $0x20] sm:$0xff] %v836_v48 }
 0x347   :  { %837 = vtanh.f32 %v595_v10 }
 0x34c   :  { %v597_v59 = vpop.f32.mrf.mxu2 }
 0x34d   :  { %v838_v30 = vpop.eup %837  ;;  %v598_v49 = vadd.f32 %v1225_v2, %v597_v59 }
 0x34e   :  { %648 = vst [vmem:[#allocation2 + $0x28] sm:$0xff] %v838_v30 }
 0x34f   :  { %839 = vtanh.f32 %v598_v49 }
 0x354   :  { %v600_v19 = vpop.f32.mrf.mxu2 }
 0x355   :  { %v840_v51 = vpop.eup %839  ;;  %v601_v52 = vadd.f32 %v1225_v2, %v600_v19 }
 0x356   :  { %649 = vst [vmem:[#allocation2 + $0x30] sm:$0xff] %v840_v51 }
 0x357   :  { %841 = vtanh.f32 %v601_v52 }
 0x35c   :  { %v603_v17 = vpop.f32.mrf.mxu2 }
 0x35d   :  { %v842_v31 = vpop.eup %841  ;;  %v604_v50 = vadd.f32 %v1225_v2, %v603_v17 }
 0x35e   :  { %650 = vst [vmem:[#allocation2 + $0x38] sm:$0xff] %v842_v31 }
 0x35f   :  { %843 = vtanh.f32 %v604_v50 }
 0x364   :  { %v606_v8 = vpop.f32.mrf.mxu2 }
 0x365   :  { %v844_v53 = vpop.eup %843  ;;  %v607_v12 = vadd.f32 %v1225_v2, %v606_v8 }
 0x366   :  { %651 = vst [vmem:[#allocation2 + $0x40] sm:$0xff] %v844_v53 }
 0x367   :  { %845 = vtanh.f32 %v607_v12 }
 0x36c   :  { %v609_v15 = vpop.f32.mrf.mxu2 }
 0x36d   :  { %v846_v60 = vpop.eup %845  ;;  %v610_v36 = vadd.f32 %v1225_v2, %v609_v15 }
 0x36e   :  { %652 = vst [vmem:[#allocation2 + $0x48] sm:$0xff] %v846_v60 }
 0x36f   :  { %847 = vtanh.f32 %v610_v36 }
 0x374   :  { %v612_v54 = vpop.f32.mrf.mxu2 }
 0x375   :  { %v848_v55 = vpop.eup %847  ;;  %v613_v56 = vadd.f32 %v1225_v2, %v612_v54 }
 0x376   :  { %653 = vst [vmem:[#allocation2 + $0x50] sm:$0xff] %v848_v55 }
 0x377   :  { %849 = vtanh.f32 %v613_v56 }
 0x37d   :  { %v850_v21 = vpop.eup %849 }
 0x37e   :  { %654 = vst [vmem:[#allocation2 + $0x58] sm:$0xff] %v850_v21 }
 0x37f   :  { %671 = dma.vmem_to_hbm [thread:$0]  %s664_s6, 2048, %s666_s9, [#allocation3], %s878_s10, %s878_s10, %s879_s11  }
 0x380   :  { %875 = dma.done.wait [#allocation3], 2048  }
 0x381   :  { %876 = vsyncadd [#allocation3], 4294965248 }
 0x382   :  { %676 = vsyncpa [#allocation3], 1 }

</bundles_post_ra>
